<compile_context>
chip_gen: v6e
topology: v6e:2x2x1
jax: 0.10.0
libtpu: 0.0.40
codegen_flags: <defaults>
</compile_context>

<pallas_src>
import jax
import jax.numpy as jnp
from jax.experimental import pallas as pl
from jax.experimental.pallas import tpu as pltpu

# CartPole-like dims from the original script.
STATE_NUMBER = 4
HIDDEN = 32
ACTION_NUMBER = 2

# TPU-aligned dims.
HIDDEN_PAD = 128   # lane width / MXU-native column count
OUT_PAD = 8        # small output slab (full-array last dim => legal block shape)


def mlp_kernel(x_ref, w1_ref, b1_ref, w2_ref, b2_ref, w3_ref, b3_ref, o_ref):
    x = x_ref[...]                                              # (tb, 4)
    # Linear(state, 32) + ReLU   -> (tb, 4) @ (4, 128)
    h1 = jnp.dot(x, w1_ref[...], preferred_element_type=jnp.float32) + b1_ref[...]
    h1 = jnp.maximum(h1, 0.0)
    # Linear(32, 32) + ReLU      -> (tb, 128) @ (128, 128)
    h2 = jnp.dot(h1, w2_ref[...], preferred_element_type=jnp.float32) + b2_ref[...]
    h2 = jnp.maximum(h2, 0.0)
    # Linear(32, action_number)  -> (tb, 128) @ (128, 8)  (8-wide output slab)
    q = jnp.dot(h2, w3_ref[...], preferred_element_type=jnp.float32) + b3_ref[...]
    o_ref[...] = q.astype(o_ref.dtype)


def init_params(key):
    """Deterministic init mimicking PyTorch nn.Linear default U(-1/sqrt(in), 1/sqrt(in))."""
    keys = jax.random.split(key, 6)

    def linear(kw, kb, fan_in, fan_out):
        bound = 1.0 / jnp.sqrt(float(fan_in))
        w = jax.random.uniform(kw, (fan_in, fan_out), jnp.float32, -bound, bound)
        b = jax.random.uniform(kb, (1, fan_out), jnp.float32, -bound, bound)
        return w, b

    w1, b1 = linear(keys[0], keys[1], STATE_NUMBER, HIDDEN)
    w2, b2 = linear(keys[2], keys[3], HIDDEN, HIDDEN)
    w3, b3 = linear(keys[4], keys[5], HIDDEN, ACTION_NUMBER)
    return (w1, b1, w2, b2, w3, b3)


def pad_params(params):
    """Zero-pad weights/biases to TPU-aligned shapes (done once, outside the hot path).

    NOTE: if padded params are ever updated in padded form (optimizer/weight
    decay), re-zero the padded lanes afterwards so they cannot leak into the
    output through w3's padded rows.
    """
    w1, b1, w2, b2, w3, b3 = params

    def pad2(a, rows, cols):
        return jnp.pad(a, ((0, rows - a.shape[0]), (0, cols - a.shape[1])))

    w1p = pad2(w1, STATE_NUMBER, HIDDEN_PAD)   # (4, 128)  -- no K pad needed
    b1p = pad2(b1, 1, HIDDEN_PAD)              # (1, 128)
    w2p = pad2(w2, HIDDEN_PAD, HIDDEN_PAD)     # (128, 128)
    b2p = pad2(b2, 1, HIDDEN_PAD)              # (1, 128)
    w3p = pad2(w3, HIDDEN_PAD, OUT_PAD)        # (128, 8)
    b3p = pad2(b3, 1, OUT_PAD)                 # (1, 8)
    return (w1p, b1p, w2p, b2p, w3p, b3p)


def _round_up(n, m):
    return ((n + m - 1) // m) * m


def net_forward(x, padded_params, tile_b=4096):
    """x: (B, STATE_NUMBER) f32 -> (B, ACTION_NUMBER) f32."""
    w1, b1, w2, b2, w3, b3 = padded_params
    B = x.shape[0]

    # Adaptive batch tile: multiple of 8 (f32 sublane), sized so the last tile
    # is never mostly padding and large batches run in few grid steps.
    # Per-tile VMEM at tb=4096 is ~3 MiB (x/out double buffers + weights +
    # h1/h2 intermediates), well under every chip's scoped VMEM default
    # (16 MiB v5e, 32 MiB v6e/v7x), so no vmem_limit override is needed.
    b_rounded = _round_up(B, 8)
    grid_b = pl.cdiv(b_rounded, tile_b)
    tb = _round_up(pl.cdiv(b_rounded, grid_b), 8)
    b_pad = grid_b * tb

    # Only the batch dim is padded (and only when needed); padded rows are
    # discarded by the [:B] slice below.
    x_pad = x if b_pad == B else jnp.pad(x, ((0, b_pad - B), (0, 0)))

    weight_spec = lambda a: pl.BlockSpec(a.shape, lambda i: (0, 0))  # VMEM-resident

    # Advisory cost estimate for XLA's scheduler when fused in a train step.
    flops = 2 * b_pad * (STATE_NUMBER * HIDDEN_PAD
                         + HIDDEN_PAD * HIDDEN_PAD
                         + HIDDEN_PAD * OUT_PAD)
    bytes_accessed = 4 * (b_pad * STATE_NUMBER + b_pad * OUT_PAD
                          + STATE_NUMBER * HIDDEN_PAD + HIDDEN_PAD * HIDDEN_PAD
                          + HIDDEN_PAD * OUT_PAD + 2 * HIDDEN_PAD + OUT_PAD)
    cost = pl.CostEstimate(flops=flops, transcendentals=0,
                           bytes_accessed=bytes_accessed)

    out = pl.pallas_call(
        mlp_kernel,
        out_shape=jax.ShapeDtypeStruct((b_pad, OUT_PAD), jnp.float32),
        grid=(grid_b,),
        in_specs=[
            pl.BlockSpec((tb, STATE_NUMBER), lambda i: (i, 0)),
            weight_spec(w1), weight_spec(b1),
            weight_spec(w2), weight_spec(b2),
            weight_spec(w3), weight_spec(b3),
        ],
        out_specs=pl.BlockSpec((tb, OUT_PAD), lambda i: (i, 0)),
        compiler_params=pltpu.CompilerParams(
            dimension_semantics=("parallel",),   # shards batch tiles across v7x's 2 TCs
        ),
        cost_estimate=cost,
    )(x_pad, w1, b1, w2, b2, w3, b3)

    return out[:B, :ACTION_NUMBER]


def net_forward_ref(x, params):
    w1, b1, w2, b2, w3, b3 = params
    h1 = jnp.maximum(x @ w1 + b1, 0.0)
    h2 = jnp.maximum(h1 @ w2 + b2, 0.0)
    return h2 @ w3 + b3


if __name__ == "__main__":
    key = jax.random.PRNGKey(0)
    kx, kp = jax.random.split(key)

    B = 8
    x = jax.random.normal(kx, (B, STATE_NUMBER), jnp.float32)
    params = init_params(kp)
    padded = pad_params(params)

    q = jax.block_until_ready(net_forward(x, padded))
    q_ref = net_forward_ref(x, params)
    assert q.shape == (B, ACTION_NUMBER)
    assert jnp.allclose(q, q_ref, atol=1e-5, rtol=1e-5)

    # Larger, non-tile-aligned batch to exercise the adaptive-tile/grid path
    # (uses a small tile_b so multiple grid steps and batch padding are hit).
    B2 = 1000
    x2 = jax.random.normal(jax.random.PRNGKey(1), (B2, STATE_NUMBER), jnp.float32)
    q2 = jax.block_until_ready(net_forward(x2, padded, tile_b=256))
    q2_ref = net_forward_ref(x2, params)
    assert q2.shape == (B2, ACTION_NUMBER)
    assert jnp.allclose(q2, q2_ref, atol=1e-5, rtol=1e-5)

    print("KERNEL_OK")
</pallas_src>

<mosaic_0001>
module attributes {stable_mosaic.version = 11 : i64} {
  func.func @mlp_kernel(%arg0: i32, %arg1: memref<8x4xf32, #tpu.memory_space<vmem>>, %arg2: memref<4x128xf32, #tpu.memory_space<vmem>>, %arg3: memref<1x128xf32, #tpu.memory_space<vmem>>, %arg4: memref<128x128xf32, #tpu.memory_space<vmem>>, %arg5: memref<1x128xf32, #tpu.memory_space<vmem>>, %arg6: memref<128x8xf32, #tpu.memory_space<vmem>>, %arg7: memref<1x8xf32, #tpu.memory_space<vmem>>, %arg8: memref<8x8xf32, #tpu.memory_space<vmem>>) attributes {dimension_semantics = [#tpu.dimension_semantics<parallel>], iteration_bounds = array<i64: 1>, scalar_prefetch = 0 : i64, scratch_operands = 0 : i64, tpu.core_type = #tpu.core_type<tc>, window_params = [{transform_indices = @transform_0, window_bounds = array<i64: 8, 4>}, {pipeline_mode = #tpu.pipeline_mode<synchronous>, transform_indices = @transform_1, window_bounds = array<i64: 4, 128>}, {pipeline_mode = #tpu.pipeline_mode<synchronous>, transform_indices = @transform_2, window_bounds = array<i64: 1, 128>}, {pipeline_mode = #tpu.pipeline_mode<synchronous>, transform_indices = @transform_3, window_bounds = array<i64: 128, 128>}, {pipeline_mode = #tpu.pipeline_mode<synchronous>, transform_indices = @transform_4, window_bounds = array<i64: 1, 128>}, {pipeline_mode = #tpu.pipeline_mode<synchronous>, transform_indices = @transform_5, window_bounds = array<i64: 128, 8>}, {pipeline_mode = #tpu.pipeline_mode<synchronous>, transform_indices = @transform_6, window_bounds = array<i64: 1, 8>}, {transform_indices = @transform_7, window_bounds = array<i64: 8, 8>}]} {
    %c0 = arith.constant 0 : index
    %c0_0 = arith.constant 0 : index
    %0 = vector.load %arg1[%c0, %c0_0] : memref<8x4xf32, #tpu.memory_space<vmem>>, vector<8x4xf32>
    %c0_1 = arith.constant 0 : index
    %c0_2 = arith.constant 0 : index
    %1 = vector.load %arg2[%c0_1, %c0_2] : memref<4x128xf32, #tpu.memory_space<vmem>>, vector<4x128xf32>
    %cst = arith.constant dense<0.000000e+00> : vector<8x128xf32>
    %2 = tpu.matmul %0, %1, %cst {dimension_numbers = #tpu.dot_dimension_numbers<[1], [0], [0], [1], [0, 0, 1, 1], [], []>} : vector<8x4xf32>, vector<4x128xf32>, vector<8x128xf32> -> vector<8x128xf32>
    %c0_3 = arith.constant 0 : index
    %c0_4 = arith.constant 0 : index
    %3 = vector.load %arg3[%c0_3, %c0_4] : memref<1x128xf32, #tpu.memory_space<vmem>>, vector<1x128xf32>
    %4 = vector.broadcast %3 : vector<1x128xf32> to vector<8x128xf32>
    %5 = arith.addf %2, %4 : vector<8x128xf32>
    %cst_5 = arith.constant 0.000000e+00 : f32
    %6 = vector.broadcast %cst_5 : f32 to vector<8x128xf32>
    %7 = arith.maximumf %5, %6 : vector<8x128xf32>
    %c0_6 = arith.constant 0 : index
    %c0_7 = arith.constant 0 : index
    %8 = vector.load %arg4[%c0_6, %c0_7] : memref<128x128xf32, #tpu.memory_space<vmem>>, vector<128x128xf32>
    %cst_8 = arith.constant dense<0.000000e+00> : vector<8x128xf32>
    %9 = tpu.matmul %7, %8, %cst_8 {dimension_numbers = #tpu.dot_dimension_numbers<[1], [0], [0], [1], [0, 0, 1, 1], [], []>} : vector<8x128xf32>, vector<128x128xf32>, vector<8x128xf32> -> vector<8x128xf32>
    %c0_9 = arith.constant 0 : index
    %c0_10 = arith.constant 0 : index
    %10 = vector.load %arg5[%c0_9, %c0_10] : memref<1x128xf32, #tpu.memory_space<vmem>>, vector<1x128xf32>
    %11 = vector.broadcast %10 : vector<1x128xf32> to vector<8x128xf32>
    %12 = arith.addf %9, %11 : vector<8x128xf32>
    %cst_11 = arith.constant 0.000000e+00 : f32
    %13 = vector.broadcast %cst_11 : f32 to vector<8x128xf32>
    %14 = arith.maximumf %12, %13 : vector<8x128xf32>
    %c0_12 = arith.constant 0 : index
    %c0_13 = arith.constant 0 : index
    %15 = vector.load %arg6[%c0_12, %c0_13] : memref<128x8xf32, #tpu.memory_space<vmem>>, vector<128x8xf32>
    %cst_14 = arith.constant dense<0.000000e+00> : vector<8x8xf32>
    %16 = tpu.matmul %14, %15, %cst_14 {dimension_numbers = #tpu.dot_dimension_numbers<[1], [0], [0], [1], [0, 0, 1, 1], [], []>} : vector<8x128xf32>, vector<128x8xf32>, vector<8x8xf32> -> vector<8x8xf32>
    %c0_15 = arith.constant 0 : index
    %c0_16 = arith.constant 0 : index
    %17 = vector.load %arg7[%c0_15, %c0_16] : memref<1x8xf32, #tpu.memory_space<vmem>>, vector<1x8xf32>
    %18 = vector.broadcast %17 : vector<1x8xf32> to vector<8x8xf32>
    %19 = arith.addf %16, %18 : vector<8x8xf32>
    %c0_17 = arith.constant 0 : index
    %c0_18 = arith.constant 0 : index
    %20 = vector.load %arg8[%c0_17, %c0_18] : memref<8x8xf32, #tpu.memory_space<vmem>>, vector<8x8xf32>
    tpu.vector_store %arg8[%c0_17, %c0_18], %19 {strides = array<i32>} : memref<8x8xf32, #tpu.memory_space<vmem>>, vector<8x8xf32>,
    return
  }
  func.func @transform_0(%arg0: i32) -> (i32, i32) {
    %c0_i32 = arith.constant 0 : i32
    %c0_i32_0 = arith.constant 0 : i32
    return %arg0, %c0_i32 : i32, i32
  }
  func.func @transform_1(%arg0: i32) -> (i32, i32) {
    %c0_i32 = arith.constant 0 : i32
    %c0_i32_0 = arith.constant 0 : i32
    %c0_i32_1 = arith.constant 0 : i32
    return %c0_i32, %c0_i32_0 : i32, i32
  }
  func.func @transform_2(%arg0: i32) -> (i32, i32) {
    %c0_i32 = arith.constant 0 : i32
    %c0_i32_0 = arith.constant 0 : i32
    %c0_i32_1 = arith.constant 0 : i32
    return %c0_i32, %c0_i32_0 : i32, i32
  }
  func.func @transform_3(%arg0: i32) -> (i32, i32) {
    %c0_i32 = arith.constant 0 : i32
    %c0_i32_0 = arith.constant 0 : i32
    %c0_i32_1 = arith.constant 0 : i32
    return %c0_i32, %c0_i32_0 : i32, i32
  }
  func.func @transform_4(%arg0: i32) -> (i32, i32) {
    %c0_i32 = arith.constant 0 : i32
    %c0_i32_0 = arith.constant 0 : i32
    %c0_i32_1 = arith.constant 0 : i32
    return %c0_i32, %c0_i32_0 : i32, i32
  }
  func.func @transform_5(%arg0: i32) -> (i32, i32) {
    %c0_i32 = arith.constant 0 : i32
    %c0_i32_0 = arith.constant 0 : i32
    %c0_i32_1 = arith.constant 0 : i32
    return %c0_i32, %c0_i32_0 : i32, i32
  }
  func.func @transform_6(%arg0: i32) -> (i32, i32) {
    %c0_i32 = arith.constant 0 : i32
    %c0_i32_0 = arith.constant 0 : i32
    %c0_i32_1 = arith.constant 0 : i32
    return %c0_i32, %c0_i32_0 : i32, i32
  }
  func.func @transform_7(%arg0: i32) -> (i32, i32) {
    %c0_i32 = arith.constant 0 : i32
    %c0_i32_0 = arith.constant 0 : i32
    return %arg0, %c0_i32 : i32, i32
  }
}

</mosaic_0001>

<bundles_post_ra>
// kernel: tpu_custom_call.1
= control target key start
LH: loop header
LB: loop body
LE: loop exit
PB: predicated region body
PF: predicated region fallthrough
CT: control target
= control target key end

     0   :  { %vm40_vm0 = vcmask 1043456   ;;  %v459_v2 = vmov 0.0   ;;  %vm460_vm1 = vmmov 0   ;;  %vm36_vm2 = vcmask 31744   ;;  %s655_s0 = inlined_call_operand.vmem [shape: f32[8,4], index: 0, kind: input, shape index: {}]   ;;  %s656_s1 = inlined_call_operand.vmem [shape: f32[4,128], index: 1, kind: input, shape index: {}]   ;;  %s657_s2 = inlined_call_operand.vmem [shape: f32[1,128], index: 2, kind: input, shape index: {}]   ;;  %s658_s3 = inlined_call_operand.vmem [shape: f32[128,128], index: 3, kind: input, shape index: {}]   ;;  %s659_s4 = inlined_call_operand.vmem [shape: f32[1,128], index: 4, kind: input, shape index: {}]   ;;  %s660_s5 = inlined_call_operand.vmem [shape: f32[128,8], index: 5, kind: input, shape index: {}]   ;;  %s661_s6 = inlined_call_operand.vmem [shape: f32[1,8], index: 6, kind: input, shape index: {}]   ;;  %s662_s7 = inlined_call_operand.hbm [shape: f32[8,8], index: 7, kind: output, shape index: {}]  }
   0x1   :  { %v28_v0 = vld [vmem:[%s656_s1] sm:$0xf]  ;;  %359 = vmatprep.subr.mxu0 %v459_v2  ;;  %361 = vmatprep.mubr.msk.f32.mxu0 %vm460_vm1, %v459_v2  ;;  %v130_v3 = vld [vmem:[%s658_s3 + $0x78] sm:$0xff]  ;;  %v129_v4 = vld [vmem:[%s658_s3 + $0x70] sm:$0xff] }
   0x2   :  { %v27_v1 = vld [vmem:[%s655_s0] sm:$0xff]  ;;  %360 = vmatpush3.msk.msra.mxu0 %vm40_vm0, %v28_v0  ;;  %364 = vmatprep.subr.mxu1 %v459_v2  ;;  %v128_v5 = vld [vmem:[%s658_s3 + $0x68] sm:$0xff] }
   0x3   :  { %362 = vmatmul.mubr.msk.f32.vlgmr.msra.gmra.mxu0 %vm36_vm2, %v27_v1  ;;  %365 = vmatpush3.msra.mxu1 %v130_v3 }
   0x4   :  { %366 = vmatprep.subr.mxu1 %v459_v2  ;;  %396 = vmatprep.mubr.msk.f32.mxu1 %vm460_vm1, %v459_v2 }
   0x5   :  { %367 = vmatpush3.msra.mxu1 %v129_v4  ;;  %399 = vmatprep.subr.mxu0 %v459_v2 }
   0x6   :  { %12 = vsyncpa [#allocation3], 0  ;;  %368 = vmatprep.subr.mxu1 %v459_v2  ;;  %v127_v6 = vld [vmem:[%s658_s3 + $0x60] sm:$0xff]  ;;  %431 = vmatprep.mubr.msk.f32.mxu0 %vm460_vm1, %v459_v2  ;;  %v126_v7 = vld [vmem:[%s658_s3 + $0x58] sm:$0xff]  ;;  %s461_s20 = smov [#allocation2]   ;;  %vm302_vm3 = vcmask 64512  }
   0x7   :  { %369 = vmatpush3.msra.mxu1 %v128_v5  ;;  %v125_v8 = vld [vmem:[%s658_s3 + $0x50] sm:$0xff]  ;;  %v124_v9 = vld [vmem:[%s658_s3 + $0x48] sm:$0xff]  ;;  %v123_v10 = vld [vmem:[%s658_s3 + $0x40] sm:$0xff]  ;;  %s310_s21 = sshll.u32 %s461_s20, 4  ;;  %s311_s21 = int_to_ptr.vmem [resolvable:$true] %s310_s21 }
   0x8   :  { %370 = vmatprep.subr.mxu1 %v459_v2  ;;  %v122_v11 = vld [vmem:[%s658_s3 + $0x38] sm:$0xff]  ;;  %v121_v12 = vld [vmem:[%s658_s3 + $0x30] sm:$0xff]  ;;  %v120_v13 = vld [vmem:[%s658_s3 + $0x28] sm:$0xff]  ;;  %p442_p1 = scmp.lt.s32.totalorder %s311_s21, %s311_s21 }
   0x9   :  { %371 = vmatpush3.msra.mxu1 %v127_v6  ;;  %v119_v14 = vld [vmem:[%s658_s3 + $0x20] sm:$0xff]  ;;  %v118_v15 = vld [vmem:[%s658_s3 + $0x18] sm:$0xff]  ;;  %v117_v16 = vld [vmem:[%s658_s3 + $0x10] sm:$0xff] }
   0xa   :  { %372 = vmatprep.subr.mxu1 %v459_v2  ;;  %v116_v17 = vld [vmem:[%s658_s3 + $0x8] sm:$0xff]  ;;  %v115_v18 = vld [vmem:[%s658_s3] sm:$0xff]  ;;  %v224_v19 = vld [vmem:[%s660_s5 + $0x78] sm:$0xff] }
   0xb   :  { %373 = vmatpush3.msra.mxu1 %v126_v7  ;;  %v223_v20 = vld [vmem:[%s660_s5 + $0x70] sm:$0xff]  ;;  %400 = vmatpush3.msra.mxu0 %v224_v19  ;;  %v222_v21 = vld [vmem:[%s660_s5 + $0x68] sm:$0xff]  ;;  %v221_v22 = vld [vmem:[%s660_s5 + $0x60] sm:$0xff] }
   0xc   :  { %374 = vmatprep.subr.mxu1 %v459_v2  ;;  %401 = vmatprep.subr.mxu0 %v459_v2  ;;  %v220_v23 = vld [vmem:[%s660_s5 + $0x58] sm:$0xff]  ;;  %v219_v24 = vld [vmem:[%s660_s5 + $0x50] sm:$0xff]  ;;  %v218_v25 = vld [vmem:[%s660_s5 + $0x48] sm:$0xff] }
   0xd   :  { %375 = vmatpush3.msra.mxu1 %v125_v8  ;;  %402 = vmatpush3.msra.mxu0 %v223_v20  ;;  %v217_v26 = vld [vmem:[%s660_s5 + $0x40] sm:$0xff]  ;;  %v216_v27 = vld [vmem:[%s660_s5 + $0x38] sm:$0xff]  ;;  %v215_v28 = vld [vmem:[%s660_s5 + $0x30] sm:$0xff] }
   0xe   :  { %376 = vmatprep.subr.mxu1 %v459_v2  ;;  %403 = vmatprep.subr.mxu0 %v459_v2  ;;  %v214_v29 = vld [vmem:[%s660_s5 + $0x28] sm:$0xff]  ;;  %v213_v30 = vld [vmem:[%s660_s5 + $0x20] sm:$0xff]  ;;  %v212_v31 = vld [vmem:[%s660_s5 + $0x18] sm:$0xff] }
   0xf   :  { %377 = vmatpush3.msra.mxu1 %v124_v9  ;;  %404 = vmatpush3.msra.mxu0 %v222_v21  ;;  %v318_v32 = vld [vmem:[%s657_s2] ss:$0 sm:$0xff]  ;;  %v211_v37 = vld [vmem:[%s660_s5 + $0x10] sm:$0xff]  ;;  %v210_v38 = vld [vmem:[%s660_s5 + $0x8] sm:$0xff] }
  0x10   :  { %378 = vmatprep.subr.mxu1 %v459_v2  ;;  %405 = vmatprep.subr.mxu0 %v459_v2  ;;  %v209_v39 = vld [vmem:[%s660_s5] sm:$0xff]  ;;  %s437_s5 = scalar_lea.vmem %s311_s21, 128 }
  0x11   :  { %379 = vmatpush3.msra.mxu1 %v123_v10  ;;  %406 = vmatpush3.msra.mxu0 %v221_v22  ;;  %v321_v40 = vld [vmem:[%s659_s4] ss:$0 sm:$0xff]  ;;  %p438_p0 = scmp.ne.s32.totalorder %s311_s21, %s437_s5  ;;  %p443_p2 = scmp.lt.s32.totalorder %s437_s5, %s437_s5 }
  0x12   :  { %380 = vmatprep.subr.mxu1 %v459_v2  ;;  %407 = vmatprep.subr.mxu0 %v459_v2  ;;  %v322_v45 = vld [vmem:[%s661_s6] ss:$0 sm:$0xff] }
  0x13   :  { %381 = vmatpush3.msra.mxu1 %v122_v11  ;;  %408 = vmatpush3.msra.mxu0 %v220_v23  ;;  %p444_p3 = por %p443_p2, %p442_p1 }
  0x14   :  { %382 = vmatprep.subr.mxu1 %v459_v2  ;;  %409 = vmatprep.subr.mxu0 %v459_v2 }
  0x15   :  { %383 = vmatpush3.msra.mxu1 %v121_v12  ;;  %410 = vmatpush3.msra.mxu0 %v219_v24  ;;  %p445_p4 = pnand %p444_p3, %p438_p0 }
  0x16   :  { %384 = vmatprep.subr.mxu1 %v459_v2  ;;  %411 = vmatprep.subr.mxu0 %v459_v2 }
  0x17   :  { %385 = vmatpush3.msra.mxu1 %v120_v13  ;;  %412 = vmatpush3.msra.mxu0 %v218_v25 }
  0x18   :  { %386 = vmatprep.subr.mxu1 %v459_v2  ;;  %413 = vmatprep.subr.mxu0 %v459_v2 }
  0x19   :  { %387 = vmatpush3.msra.mxu1 %v119_v14  ;;  %414 = vmatpush3.msra.mxu0 %v217_v26 }
  0x1a   :  { %388 = vmatprep.subr.mxu1 %v459_v2  ;;  %415 = vmatprep.subr.mxu0 %v459_v2 }
  0x1b   :  { %389 = vmatpush3.msra.mxu1 %v118_v15  ;;  %416 = vmatpush3.msra.mxu0 %v216_v27 }
  0x1c   :  { %390 = vmatprep.subr.mxu1 %v459_v2  ;;  %417 = vmatprep.subr.mxu0 %v459_v2 }
  0x1d   :  { %391 = vmatpush3.msra.mxu1 %v117_v16  ;;  %418 = vmatpush3.msra.mxu0 %v215_v28 }
  0x1e   :  { %392 = vmatprep.subr.mxu1 %v459_v2  ;;  %419 = vmatprep.subr.mxu0 %v459_v2 }
  0x1f   :  { %393 = vmatpush3.msra.mxu1 %v116_v17  ;;  %420 = vmatpush3.msra.mxu0 %v214_v29 }
  0x20   :  { %394 = vmatprep.subr.mxu1 %v459_v2  ;;  %421 = vmatprep.subr.mxu0 %v459_v2 }
  0x21   :  { %395 = vmatpush3.msra.mxu1 %v115_v18  ;;  %422 = vmatpush3.msra.mxu0 %v213_v30 }
  0x22   :  { %423 = vmatprep.subr.mxu0 %v459_v2 }
  0x23   :  { %424 = vmatpush3.msra.mxu0 %v212_v31 }
  0x24   :  { %425 = vmatprep.subr.mxu0 %v459_v2 }
  0x25   :  { %426 = vmatpush3.msra.mxu0 %v211_v37 }
  0x26   :  { %427 = vmatprep.subr.mxu0 %v459_v2 }
  0x27   :  { %428 = vmatpush3.msra.mxu0 %v210_v38 }
  0x28   :  { %429 = vmatprep.subr.mxu0 %v459_v2 }
  0x29   :  { %430 = vmatpush3.msra.mxu0 %v209_v39 }
  0xc3   :  { %v110_v33 = vpop.f32.mrf.mxu0 }
  0xc4   :  { %v111_v34 = vadd.f32 %v318_v32, %v110_v33 }
  0xc5   :  { %v363_v35 = vpop.f32.mrf.mxu0 }
  0xc6   :  { %v114_v36 = vmax.f32 %v111_v34, 0.0 }
  0xc8   :  { %397 = vmatmul.mubr.f32.vlgmr.msra.gmra.mxu1 %v114_v36 }
 0x188   :  { %v204_v41 = vpop.f32.mrf.mxu1 }
 0x189   :  { %v205_v42 = vadd.f32 %v321_v40, %v204_v41 }
 0x18a   :  { %v398_v43 = vpop.f32.mrf.mxu1 }
 0x18b   :  { %v208_v44 = vmax.f32 %v205_v42, 0.0 }
 0x18d   :  { %432 = vmatmul.mubr.f32.vlgmr.msra.gmra.mxu0 %v208_v44 }
 0x24d   :  { %v298_v46 = vpop.f32.mrf.mxu0 }
 0x24e   :  { %v299_v47 = vadd.f32 %v322_v45, %v298_v46 }
 0x24f   :  { %v433_v48 = vpop.f32.mrf.mxu0 }
 0x250   :  { %303 = vst.msk [vmem:[#allocation2] sm:$0xff] %vm302_vm3, %v299_v47 }
 0x251   :  { %448 = shalt.err (!%p445_p4)
}
 0x252   :  { %313 = dma.vmem_to_hbm [thread:$0]  %s311_s21, 128, %s662_s7, [#allocation3]  }
 0x253   :  { %457 = dma.done.wait [#allocation3], 128  }
 0x254   :  { %458 = vsyncadd [#allocation3], 4294967168 }
 0x255   :  { %317 = vsyncpa [#allocation3], 1 }

</bundles_post_ra>
